<compile_context>
chip_gen: v7x
topology: tpu7x:2x2x1
jax: 0.10.0
libtpu: 0.0.40
codegen_flags: <defaults>
</compile_context>

<pallas_src>
import jax
import jax.numpy as jnp
from jax.experimental import pallas as pl
from jax.experimental.pallas import tpu as pltpu


def part_att_kernel(x_ref, w1_ref, b1_ref, w2_ref, b2_ref, oh_ref, o_ref, acc_ref):
    # x_ref:  (tn, C, tk)   block of x reshaped/padded to (N, C, TV_pad), native dtype
    # w1_ref: (C, inner)    conv1 weight, BN + 1/(T*V) folded in, pre-transposed
    # b1_ref: (1, inner)    conv1 bias with BN folded in
    # w2_ref: (inner, C*P)  conv2 weight, pre-transposed
    # b2_ref: (1, C*P)
    # oh_ref: (P, V)        one-hot part->joint selection (index_select as matmul)
    # o_ref:  (tn, C, V)    per-joint attention weights (before the T broadcast)
    # acc_ref:(tn, C, 128)  f32 lane-width accumulator (tk/128x smaller than block)
    k = pl.program_id(1)
    tk = x_ref.shape[-1]
    n_slabs = tk // 128

    # Fold this block's tk lanes down to one 128-wide slab with pure VPU adds
    # (all slices are lane-tile aligned).  Upcast from the native input dtype per
    # slab so HBM traffic stays in the input dtype.
    partial = x_ref[:, :, 0:128].astype(jnp.float32)
    for j in range(1, n_slabs):
        partial = partial + x_ref[:, :, j * 128:(j + 1) * 128].astype(jnp.float32)

    # First reduction step assigns (no zero-fill pass); later steps accumulate.
    @pl.when(k == 0)
    def _():
        acc_ref[...] = partial

    @pl.when(k > 0)
    def _():
        acc_ref[...] += partial

    @pl.when(k == pl.num_programs(1) - 1)
    def _():
        tn, C, V = o_ref.shape
        P = oh_ref.shape[0]

        # Single cross-lane fold at the very end.  The 1/(T*V) mean factor and
        # eval-mode BatchNorm are folded into w1/b1 on the host, so zero-padded
        # TV lanes do not change the result.
        pooled = jnp.sum(acc_ref[...], axis=-1)                              # (tn, C)

        # Conv1x1 (C -> inner) + folded BN + ReLU
        h = jnp.dot(pooled, w1_ref[...],
                    preferred_element_type=jnp.float32) + b1_ref[...]        # (tn, inner)
        h = jnp.maximum(h, 0.0)

        # Conv1x1 (inner -> C*P)
        logits = jnp.dot(h, w2_ref[...],
                         preferred_element_type=jnp.float32) + b2_ref[...]   # (tn, C*P)
        logits = logits.reshape(tn, C, P)

        # softmax over the P body parts (dim=3 of the (N, C, 1, P) view).
        # Exact reciprocal: the epilogue is tiny, approx buys nothing here.
        m = jnp.max(logits, axis=-1, keepdims=True)
        e = jnp.exp(logits - m)
        att = e / jnp.sum(e, axis=-1, keepdims=True)

        # index_select(3, joints) as a tiny one-hot (P, V) matmul (no lane gather).
        o_ref[...] = jnp.einsum("ncp,pv->ncv", att, oh_ref[...],
                                preferred_element_type=jnp.float32)


def get_corr_joints(parts):
    num_joints = sum(len(p) for p in parts)
    return [j for i in range(num_joints) for j in range(len(parts)) if i in parts[j]]


def _vmem_limit_bytes():
    # Per-generation VMEM budget: ~48 MiB on v7x (64 MiB physical per TC),
    # ~96 MiB on v5e/v6e (128 MiB physical).  Fallback assumes the smaller chip.
    try:
        phys = int(pltpu.get_tpu_info().vmem_capacity_bytes)
    except Exception:
        phys = 64 * 1024 * 1024
    return (phys * 3) // 4


def _select_tiles(N, C, V, TV_pad, x_itemsize, weight_bytes, budget_bytes):
    """Pick (tn, tk) so the double-buffered working set fits the VMEM budget."""
    def footprint(tn, tk):
        x_blk = 2 * tn * C * tk * x_itemsize      # double-buffered input block
        acc = tn * C * 128 * 4                    # f32 lane-width accumulator scratch
        o_blk = 2 * tn * C * V * 4                # double-buffered output block
        return x_blk + acc + o_blk + 2 * weight_bytes + (1 << 20)  # ~1 MiB slack

    divisors = [d for d in range(1, N + 1) if N % d == 0]
    # Prefer >= 2 batch tiles so both v7x TensorCores get work (harmless on
    # single-TC v5e/v6e); among those, the largest tn that fits the budget.
    prefer = [d for d in divisors if N // d >= 2] or divisors
    fitting = [d for d in prefer if footprint(d, 128) <= budget_bytes]
    tn = max(fitting) if fitting else 1

    # Largest lane-multiple tk that divides TV_pad and fits the budget, preferring
    # >= 2 reduction steps so the next block's DMA overlaps this block's adds.
    tk_opts = [t for t in range(128, TV_pad + 1, 128)
               if TV_pad % t == 0 and footprint(tn, t) <= budget_bytes]
    if not tk_opts:
        tk = 128
    else:
        multi = [t for t in tk_opts if TV_pad // t >= 2]
        tk = max(multi) if multi else max(tk_opts)
    return tn, tk


def part_att(x, params, parts, expand=True):
    """x: (N, C, T, V) -> Part_Att.forward(x) attention map.

    expand=True (default) returns (N, C, T, V), matching the PyTorch module
    (whose expand_as is a view).  Pass expand=False to get the (N, C, 1, V)
    attention and let the consumer broadcast/fuse the downstream multiply,
    avoiding an extra N*C*T*V HBM write.
    """
    N, C, T, V = x.shape
    P = len(parts)
    inner = params["w1"].shape[0]
    TV = T * V
    joints = get_corr_joints(parts)

    # --- host-side parameter folding (one-time cost) ---
    eps = 1e-5
    scale = params["gamma"] * jax.lax.rsqrt(params["var"] + eps)              # (inner,)
    w1_t = (params["w1"] * (scale / TV)[:, None]).T                            # (C, inner)
    b1_f = ((params["b1"] - params["mean"]) * scale
            + params["beta"]).reshape(1, inner)
    w2_t = params["w2"].T                                                      # (inner, C*P)
    b2_f = params["b2"].reshape(1, C * P)
    onehot = (jnp.arange(P, dtype=jnp.int32)[:, None]
              == jnp.asarray(joints, dtype=jnp.int32)[None, :]).astype(jnp.float32)

    # Lane-dense layout for the reduction: last dim is T*V, zero-padded to a
    # multiple of 128 (correct: the true 1/(T*V) is already in w1).  x stays in
    # its native dtype; the kernel upcasts per block.
    x_r = x.reshape(N, C, TV)
    TV_pad = -(-TV // 128) * 128
    if TV_pad != TV:
        x_r = jnp.pad(x_r, ((0, 0), (0, 0), (0, TV_pad - TV)))

    weight_bytes = 4 * (C * inner + inner + inner * C * P + C * P + P * V)
    vmem_limit = _vmem_limit_bytes()
    tn, tk = _select_tiles(N, C, V, TV_pad, x_r.dtype.itemsize, weight_bytes,
                           budget_bytes=int(vmem_limit * 0.8))
    grid = (N // tn, TV_pad // tk)

    def const_spec(shape):
        return pl.BlockSpec(shape, lambda i, k: (0,) * len(shape))

    cost = pl.CostEstimate(
        flops=int(N * C * TV_pad + 2 * N * C * inner
                  + 2 * N * inner * C * P + 2 * N * C * P * V),
        transcendentals=int(N * C * P),
        bytes_accessed=int(N * C * TV_pad * x_r.dtype.itemsize
                           + N * C * V * 4 + weight_bytes),
    )

    out = pl.pallas_call(
        part_att_kernel,
        out_shape=jax.ShapeDtypeStruct((N, C, V), jnp.float32),
        grid_spec=pltpu.PrefetchScalarGridSpec(
            num_scalar_prefetch=0,
            grid=grid,
            in_specs=[
                pl.BlockSpec((tn, C, tk), lambda i, k: (i, 0, k)),
                const_spec((C, inner)),
                const_spec((1, inner)),
                const_spec((inner, C * P)),
                const_spec((1, C * P)),
                const_spec((P, V)),
            ],
            out_specs=pl.BlockSpec((tn, C, V), lambda i, k: (i, 0, 0)),
            scratch_shapes=[pltpu.VMEM((tn, C, 128), jnp.float32)],
        ),
        compiler_params=pltpu.CompilerParams(
            dimension_semantics=("parallel", "arbitrary"),
            vmem_limit_bytes=vmem_limit,
        ),
        cost_estimate=cost,
    )(x_r, w1_t, b1_f, w2_t, b2_f, onehot)

    att = out.reshape(N, C, 1, V)
    if expand:
        # expand_as(x): pure broadcast (a view in PyTorch).
        return jnp.broadcast_to(att, (N, C, T, V))
    return att


def part_att_ref(x, params, parts):
    """Plain-JAX reference of Part_Att.forward (eval-mode BN) for validation."""
    N, C, T, V = x.shape
    P = len(parts)
    joints = jnp.asarray(get_corr_joints(parts), dtype=jnp.int32)
    eps = 1e-5
    pooled = jnp.mean(x, axis=(2, 3))                                      # (N, C)
    h = pooled @ params["w1"].T + params["b1"]
    h = (h - params["mean"]) * jax.lax.rsqrt(params["var"] + eps) \
        * params["gamma"] + params["beta"]
    h = jnp.maximum(h, 0.0)
    logits = h @ params["w2"].T + params["b2"]                             # (N, C*P)
    att = jax.nn.softmax(logits.reshape(N, C, 1, P), axis=3)
    att = jnp.take(att, joints, axis=3)                                    # (N, C, 1, V)
    return jnp.broadcast_to(att, (N, C, T, V))


def init_params(key, channel, inner, parts):
    """Deterministic synthetic parameters matching Part_Att.__init__ shapes."""
    P = len(parts)
    k = jax.random.split(key, 8)
    return {
        # Conv2d(channel, inner, 1): weight (inner, channel, 1, 1) -> (inner, channel)
        "w1": 0.1 * jax.random.normal(k[0], (inner, channel), jnp.float32),
        "b1": 0.1 * jax.random.normal(k[1], (inner,), jnp.float32),
        # BatchNorm2d(inner) params / running stats (eval mode)
        "gamma": 1.0 + 0.1 * jax.random.normal(k[2], (inner,), jnp.float32),
        "beta": 0.1 * jax.random.normal(k[3], (inner,), jnp.float32),
        "mean": 0.1 * jax.random.normal(k[4], (inner,), jnp.float32),
        "var": jnp.abs(1.0 + 0.1 * jax.random.normal(k[5], (inner,), jnp.float32)),
        # Conv2d(inner, channel * P, 1): weight -> (channel*P, inner)
        "w2": 0.1 * jax.random.normal(k[6], (channel * P, inner), jnp.float32),
        "b2": 0.1 * jax.random.normal(k[7], (channel * P,), jnp.float32),
    }


if __name__ == "__main__":
    # Two body parts of 8 joints each -> V = 16 joints, P = 2 parts.
    parts = [list(range(8)), list(range(8, 16))]
    V = sum(len(p) for p in parts)
    N, C, T = 2, 64, 16
    reduct_ratio = 4
    inner = C // reduct_ratio

    key = jax.random.PRNGKey(0)
    kx, kp = jax.random.split(key)
    x = jax.random.normal(kx, (N, C, T, V), jnp.float32)
    params = init_params(kp, C, inner, parts)

    out = jax.block_until_ready(part_att(x, params, parts))
    ref = jax.block_until_ready(part_att_ref(x, params, parts))

    assert out.shape == (N, C, T, V), out.shape
    err = float(jnp.max(jnp.abs(out - ref)))
    assert jnp.allclose(out, ref, atol=2e-3, rtol=2e-3), err
    print("KERNEL_OK")
</pallas_src>

<mosaic_0001>
module attributes {stable_mosaic.version = 11 : i64} {
  func.func @part_att_kernel(%arg0: i32, %arg1: i32, %arg2: memref<1x64x128xf32, #tpu.memory_space<vmem>>, %arg3: memref<64x16xf32, #tpu.memory_space<vmem>>, %arg4: memref<1x16xf32, #tpu.memory_space<vmem>>, %arg5: memref<16x128xf32, #tpu.memory_space<vmem>>, %arg6: memref<1x128xf32, #tpu.memory_space<vmem>>, %arg7: memref<2x16xf32, #tpu.memory_space<vmem>>, %arg8: memref<1x64x16xf32, #tpu.memory_space<vmem>>, %arg9: memref<1x64x128xf32, #tpu.memory_space<vmem>>) attributes {dimension_semantics = [#tpu.dimension_semantics<parallel>, #tpu.dimension_semantics<arbitrary>], iteration_bounds = array<i64: 2, 2>, scalar_prefetch = 0 : i64, scratch_operands = 1 : i64, tpu.core_type = #tpu.core_type<tc>, window_params = [{transform_indices = @transform_0, window_bounds = array<i64: 1, 64, 128>}, {pipeline_mode = #tpu.pipeline_mode<synchronous>, transform_indices = @transform_1, window_bounds = array<i64: 64, 16>}, {pipeline_mode = #tpu.pipeline_mode<synchronous>, transform_indices = @transform_2, window_bounds = array<i64: 1, 16>}, {pipeline_mode = #tpu.pipeline_mode<synchronous>, transform_indices = @transform_3, window_bounds = array<i64: 16, 128>}, {pipeline_mode = #tpu.pipeline_mode<synchronous>, transform_indices = @transform_4, window_bounds = array<i64: 1, 128>}, {pipeline_mode = #tpu.pipeline_mode<synchronous>, transform_indices = @transform_5, window_bounds = array<i64: 2, 16>}, {transform_indices = @transform_6, window_bounds = array<i64: 1, 64, 16>}]} {
    %c0 = arith.constant 0 : index
    %c0_0 = arith.constant 0 : index
    %c0_1 = arith.constant 0 : index
    %0 = vector.load %arg2[%c0, %c0_0, %c0_1] : memref<1x64x128xf32, #tpu.memory_space<vmem>>, vector<1x64x128xf32>
    %c0_i32 = arith.constant 0 : i32
    %1 = arith.cmpi eq, %arg1, %c0_i32 : i32
    %2 = arith.extui %1 : i1 to i32
    %c0_i32_2 = arith.constant 0 : i32
    %3 = arith.cmpi ne, %2, %c0_i32_2 : i32
    scf.if %3 {
      %c0_6 = arith.constant 0 : index
      %c0_7 = arith.constant 0 : index
      %c0_8 = arith.constant 0 : index
      %10 = vector.load %arg9[%c0_6, %c0_7, %c0_8] : memref<1x64x128xf32, #tpu.memory_space<vmem>>, vector<1x64x128xf32>
      tpu.vector_store %arg9[%c0_6, %c0_7, %c0_8], %0 {strides = array<i32>} : memref<1x64x128xf32, #tpu.memory_space<vmem>>, vector<1x64x128xf32>,
    } else {
    }
    %c0_i32_3 = arith.constant 0 : i32
    %4 = arith.cmpi sgt, %arg1, %c0_i32_3 : i32
    %5 = arith.extui %4 : i1 to i32
    %c0_i32_4 = arith.constant 0 : i32
    %6 = arith.cmpi ne, %5, %c0_i32_4 : i32
    scf.if %6 {
      %c0_6 = arith.constant 0 : index
      %c0_7 = arith.constant 0 : index
      %c0_8 = arith.constant 0 : index
      %10 = vector.load %arg9[%c0_6, %c0_7, %c0_8] : memref<1x64x128xf32, #tpu.memory_space<vmem>>, vector<1x64x128xf32>
      %11 = arith.addf %10, %0 : vector<1x64x128xf32>
      %c0_9 = arith.constant 0 : index
      %c0_10 = arith.constant 0 : index
      %c0_11 = arith.constant 0 : index
      %12 = vector.load %arg9[%c0_9, %c0_10, %c0_11] : memref<1x64x128xf32, #tpu.memory_space<vmem>>, vector<1x64x128xf32>
      tpu.vector_store %arg9[%c0_9, %c0_10, %c0_11], %11 {strides = array<i32>} : memref<1x64x128xf32, #tpu.memory_space<vmem>>, vector<1x64x128xf32>,
    } else {
    }
    %c1_i32 = arith.constant 1 : i32
    %7 = arith.cmpi eq, %arg1, %c1_i32 : i32
    %8 = arith.extui %7 : i1 to i32
    %c0_i32_5 = arith.constant 0 : i32
    %9 = arith.cmpi ne, %8, %c0_i32_5 : i32
    scf.if %9 {
      %c0_6 = arith.constant 0 : index
      %c0_7 = arith.constant 0 : index
      %c0_8 = arith.constant 0 : index
      %10 = vector.load %arg9[%c0_6, %c0_7, %c0_8] : memref<1x64x128xf32, #tpu.memory_space<vmem>>, vector<1x64x128xf32>
      %cst = arith.constant dense<0.000000e+00> : vector<1x64xf32>
      %11 = vector.multi_reduction <add>, %10, %cst [2] : vector<1x64x128xf32> to vector<1x64xf32>
      %c0_9 = arith.constant 0 : index
      %c0_10 = arith.constant 0 : index
      %12 = vector.load %arg3[%c0_9, %c0_10] : memref<64x16xf32, #tpu.memory_space<vmem>>, vector<64x16xf32>
      %cst_11 = arith.constant dense<0.000000e+00> : vector<1x16xf32>
      %13 = tpu.matmul %11, %12, %cst_11 {dimension_numbers = #tpu.dot_dimension_numbers<[1], [0], [0], [1], [0, 0, 1, 1], [], []>} : vector<1x64xf32>, vector<64x16xf32>, vector<1x16xf32> -> vector<1x16xf32>
      %c0_12 = arith.constant 0 : index
      %c0_13 = arith.constant 0 : index
      %14 = vector.load %arg4[%c0_12, %c0_13] : memref<1x16xf32, #tpu.memory_space<vmem>>, vector<1x16xf32>
      %15 = arith.addf %13, %14 : vector<1x16xf32>
      %cst_14 = arith.constant 0.000000e+00 : f32
      %16 = vector.broadcast %cst_14 : f32 to vector<1x16xf32>
      %17 = arith.maximumf %15, %16 : vector<1x16xf32>
      %c0_15 = arith.constant 0 : index
      %c0_16 = arith.constant 0 : index
      %18 = vector.load %arg5[%c0_15, %c0_16] : memref<16x128xf32, #tpu.memory_space<vmem>>, vector<16x128xf32>
      %cst_17 = arith.constant dense<0.000000e+00> : vector<1x128xf32>
      %19 = tpu.matmul %17, %18, %cst_17 {dimension_numbers = #tpu.dot_dimension_numbers<[1], [0], [0], [1], [0, 0, 1, 1], [], []>} : vector<1x16xf32>, vector<16x128xf32>, vector<1x128xf32> -> vector<1x128xf32>
      %c0_18 = arith.constant 0 : index
      %c0_19 = arith.constant 0 : index
      %20 = vector.load %arg6[%c0_18, %c0_19] : memref<1x128xf32, #tpu.memory_space<vmem>>, vector<1x128xf32>
      %21 = arith.addf %19, %20 : vector<1x128xf32>
      %22 = vector.shape_cast %21 : vector<1x128xf32> to vector<1x64x2xf32>
      %cst_20 = arith.constant dense<0xFF800000> : vector<1x64xf32>
      %23 = vector.multi_reduction <maximumf>, %22, %cst_20 [2] : vector<1x64x2xf32> to vector<1x64xf32>
      %24 = vector.shape_cast %23 : vector<1x64xf32> to vector<1x64x1xf32>
      %25 = vector.broadcast %24 : vector<1x64x1xf32> to vector<1x64x2xf32>
      %26 = arith.subf %22, %25 : vector<1x64x2xf32>
      %27 = math.exp %26 : vector<1x64x2xf32>
      %cst_21 = arith.constant dense<0.000000e+00> : vector<1x64xf32>
      %28 = vector.multi_reduction <add>, %27, %cst_21 [2] : vector<1x64x2xf32> to vector<1x64xf32>
      %29 = vector.shape_cast %28 : vector<1x64xf32> to vector<1x64x1xf32>
      %30 = vector.broadcast %29 : vector<1x64x1xf32> to vector<1x64x2xf32>
      %31 = arith.divf %27, %30 : vector<1x64x2xf32>
      %c0_22 = arith.constant 0 : index
      %c0_23 = arith.constant 0 : index
      %32 = vector.load %arg7[%c0_22, %c0_23] : memref<2x16xf32, #tpu.memory_space<vmem>>, vector<2x16xf32>
      "tpu.trace_start"() <{level = 10 : i32, message = "ncp,pv->ncv"}> : () -> ()
      %cst_24 = arith.constant dense<0.000000e+00> : vector<1x64x16xf32>
      %33 = tpu.matmul %31, %32, %cst_24 {dimension_numbers = #tpu.dot_dimension_numbers<[2], [0], [0, 1], [1], [0, 0, 0, 1, 1, 1], [], []>} : vector<1x64x2xf32>, vector<2x16xf32>, vector<1x64x16xf32> -> vector<1x64x16xf32>
      "tpu.trace_stop"() : () -> ()
      %c0_25 = arith.constant 0 : index
      %c0_26 = arith.constant 0 : index
      %c0_27 = arith.constant 0 : index
      %34 = vector.load %arg8[%c0_25, %c0_26, %c0_27] : memref<1x64x16xf32, #tpu.memory_space<vmem>>, vector<1x64x16xf32>
      tpu.vector_store %arg8[%c0_25, %c0_26, %c0_27], %33 {strides = array<i32>} : memref<1x64x16xf32, #tpu.memory_space<vmem>>, vector<1x64x16xf32>,
    } else {
    }
    return
  }
  func.func @transform_0(%arg0: i32, %arg1: i32) -> (i32, i32, i32) {
    %c0_i32 = arith.constant 0 : i32
    %c0_i32_0 = arith.constant 0 : i32
    return %arg0, %c0_i32, %arg1 : i32, i32, i32
  }
  func.func @transform_1(%arg0: i32, %arg1: i32) -> (i32, i32) {
    %c0_i32 = arith.constant 0 : i32
    %c0_i32_0 = arith.constant 0 : i32
    %c0_i32_1 = arith.constant 0 : i32
    return %c0_i32, %c0_i32_0 : i32, i32
  }
  func.func @transform_2(%arg0: i32, %arg1: i32) -> (i32, i32) {
    %c0_i32 = arith.constant 0 : i32
    %c0_i32_0 = arith.constant 0 : i32
    %c0_i32_1 = arith.constant 0 : i32
    return %c0_i32, %c0_i32_0 : i32, i32
  }
  func.func @transform_3(%arg0: i32, %arg1: i32) -> (i32, i32) {
    %c0_i32 = arith.constant 0 : i32
    %c0_i32_0 = arith.constant 0 : i32
    %c0_i32_1 = arith.constant 0 : i32
    return %c0_i32, %c0_i32_0 : i32, i32
  }
  func.func @transform_4(%arg0: i32, %arg1: i32) -> (i32, i32) {
    %c0_i32 = arith.constant 0 : i32
    %c0_i32_0 = arith.constant 0 : i32
    %c0_i32_1 = arith.constant 0 : i32
    return %c0_i32, %c0_i32_0 : i32, i32
  }
  func.func @transform_5(%arg0: i32, %arg1: i32) -> (i32, i32) {
    %c0_i32 = arith.constant 0 : i32
    %c0_i32_0 = arith.constant 0 : i32
    %c0_i32_1 = arith.constant 0 : i32
    return %c0_i32, %c0_i32_0 : i32, i32
  }
  func.func @transform_6(%arg0: i32, %arg1: i32) -> (i32, i32, i32) {
    %c0_i32 = arith.constant 0 : i32
    %c0_i32_0 = arith.constant 0 : i32
    %c0_i32_1 = arith.constant 0 : i32
    return %arg0, %c0_i32, %c0_i32_0 : i32, i32, i32
  }
}

</mosaic_0001>

<bundles_post_ra>
// kernel: tpu_custom_call.1
= control target key start
LH: loop header
LB: loop body
LE: loop exit
PB: predicated region body
PF: predicated region fallthrough
CT: control target
= control target key end

     0   :  { %s2356_s0 = inlined_call_operand.hbm [shape: f32[2,64,256], index: 0, kind: input, shape index: {}]   ;;  %s2357_s1 = inlined_call_operand.vmem [shape: f32[64,16], index: 1, kind: input, shape index: {}]   ;;  %s2358_s2 = inlined_call_operand.vmem [shape: f32[1,16], index: 2, kind: input, shape index: {}]   ;;  %s2359_s3 = inlined_call_operand.vmem [shape: f32[16,128], index: 3, kind: input, shape index: {}]   ;;  %s2360_s4 = inlined_call_operand.vmem [shape: f32[1,128], index: 4, kind: input, shape index: {}]   ;;  %s2361_s5 = inlined_call_operand.vmem [shape: f32[2,16], index: 5, kind: input, shape index: {}]   ;;  %s2362_s6 = inlined_call_operand.vmem [shape: f32[2,64,16], index: 6, kind: output, shape index: {}]  }
   0x1   :  { %2364 = sst [smem:[#allocation7_spill]] %s2361_s5 }
   0x2   :  { %11 = vsyncpa [#allocation4], 0 }
   0x3   :  { %13 = vsyncpa [#allocation4 + $0x1], 0  ;;  %s1962_s21 = smov 0   ;;  %s1964_s22 = smov 0  }
   0x4   :  { %s1966_s23 = smov 0   ;;  %s1968_s24 = smov 0  }
   0x5   :  { %s1970_s25 = smov 0   ;;  %s1972_s26 = smov 0  }
   0x6   :  { %s1974_s27 = smov 0   ;;  %s1976_s28 = smov 0  }
   0x7 LB: > { %s1479_s29 = sadd.s32 4294967295, %s1853_s28   ;;  %s28_s30 = sadd.s32 1, %s1845_s26  ;;  %s1853_s28 = sphi %s1976_s28, %s19_s28   ;;  %s1849_s27 = sphi %s1974_s27, %s2378_s27   ;;  %s1845_s26 = sphi %s1972_s26, %s2377_s26   ;;  %s1841_s25 = sphi %s1970_s25, %s2376_s25   ;;  %s1837_s24 = sphi %s1968_s24, %s2375_s24   ;;  %s1833_s23 = sphi %s1966_s23, %s2374_s23   ;;  %s1829_s22 = sphi %s1964_s22, %s2373_s22   ;;  %s1825_s21 = sphi %s1962_s21, %s2372_s21  }
   0x8   : > { %p29_p0 = scmp.ge.s32.totalorder %s28_s30, 2  ;;  %s31_s7 = sadd.s32 1, %s1849_s27 }
   0x9   : > { %s40_s8 = sadd.s32 1, %s1833_s23  ;;  %p47_p1 = scmp.ne.s32.totalorder %s1833_s23, %s1829_s22 }
   0xa   : > { %s2380_s30 = smov (%p29_p0, %s28_s30), 0  ;;  %s2382_s7 = smov (!%p29_p0, %s31_s7), %s1849_s27 }
   0xb   : > { %2365 = sst [smem:[#allocation6_spill]] %s2380_s30  ;;  %s36_s9 = ssub.s32 %s1845_s26, %s2380_s30 }
   0xc   : > { %p48_p2 = scmp.eq.s32.totalorder %s1853_s28, 0  ;;  %p33_p3 = scmp.ge.s32.totalorder %s2382_s7, 2 }
   0xd   : > { %p53_p4 = scmp.ne.s32.totalorder %s1829_s22, %s1825_s21  ;;  %p54_p6 = scmp.eq.s32.totalorder %s1479_s29, 0 }
   0xe   : > { %p2013_p5 = por %p48_p2, %p47_p1  ;;  %s2384_s7 = smov (%p33_p3, %s2382_s7), 0 }
   0xf   : > { %p2019_p7 = por %p54_p6, %p53_p4  ;;  %s35_s12 = ssub.s32 %s1849_s27, %s2384_s7 }
  0x10   : > { %p1589_p8 = scmp.lt.s32.totalorder %s1853_s28, 4  ;;  %s37_s13 = sor.u32 %s36_s9, %s35_s12 }
  0x11   : > { %s223_s14 = sand.u32 1, %s1833_s23   ;;  %p38_p9 = scmp.eq.s32.totalorder %s37_s13, 0 }
  0x12   : > { %s1483_s15 = sshll.u32 %s223_s14, 6  ;;  %s1484_s16 = sshll.u32 %s1849_s27, 4 }
  0x13   : > { %s2029_s17 = scalar_select %p38_p9, %s1833_s23, %s40_s8  }
  0x14   : > { %s232_s18 = sadd.s32 %s1845_s26, %s1484_s16  ;;  %s227_s20 = scalar_lea.vmem [#allocation3], %s1483_s15 }
  0x15   : > { %s1485_s19 = sshll.u32 %s232_s18, 7  ;;  %s235_s21 = sshll.u32 %s227_s20, 4  ;;  %s2037_s21 = int_to_ptr.vmem [resolvable:$true] %s235_s21 }
  0x16   : > { %s2035_s5 = scalar_lea.hbm %s2356_s0, %s1485_s19  ;;  %p2043_p10 = pnand %p1589_p8, %p2013_p5 }
  0x17   : > { %s2048_s9 = scalar_lea.sflag [#allocation4], %s223_s14  ;;  %s1757_s30 = scalar_lea.hbm %s2035_s5, 1024 }
  0x18   : > { %p1758_p12 = scmp.ne.s32.totalorder %s2035_s5, %s1757_s30  ;;  %p1759_p13 = pneg %p2043_p10 }
  0x19   : > { %s1762_s13 = scalar_lea.hbm %s2356_s0, 4096  ;;  %p1763_p2 = scmp.lt.u32.totalorder %s2035_s5, %s2356_s0 }
  0x1a   : > { %p1760_p0 = pnand %p1759_p13, %p1758_p12  ;;  %p1764_p3 = scmp.lt.u32.totalorder %s1762_s13, %s1757_s30 }
  0x1b   : > { %p1766_p5 = scmp.lt.u32.totalorder %s1757_s30, %s2035_s5 }
  0x1c   : > { %p1761_p1 = pneg %p1760_p0  ;;  %p1765_p4 = por %p1764_p3, %p1763_p2 }
  0x1e   : > { %p1767_p6 = por %p1766_p5, %p1765_p4 }
  0x20   : > { %p1768_p8 = pnand %p1767_p6, %p1761_p1 }
  0x22   : > { %1771 = shalt.err (!%p1768_p8)
}
  0x23   : > { %s1772_s14 = scalar_lea.vmem %s2037_s21, 1024  ;;  %s1855_s18 = smov [#allocation3]  }
  0x24   : > { %p1773_p9 = scmp.ne.s32.totalorder %s2037_s21, %s1772_s14  ;;  %s1777_s19 = sshll.u32 %s1855_s18, 4  ;;  %s1778_s19 = int_to_ptr.vmem [resolvable:$false] %s1777_s19 }
  0x25   : > { %s1779_s20 = scalar_lea.vmem %s1778_s19, 2048  ;;  %p1780_p11 = scmp.lt.s32.totalorder %s2037_s21, %s1778_s19 }
  0x26   : > { %p1775_p12 = pnand %p1773_p9, %p1759_p13  ;;  %p1781_p2 = scmp.lt.s32.totalorder %s1779_s20, %s1772_s14 }
  0x28   : > { %p1776_p0 = pneg %p1775_p12  ;;  %p1782_p3 = por %p1781_p2, %p1780_p11 }
  0x2a   : > { %p1783_p4 = pnand %p1782_p3, %p1776_p0 }
  0x2c   : > { %1786 = shalt.err (!%p1783_p4)
}
  0x2d   : > { %s1856_s29 = smov 256   ;;  %s1857_s30 = smov 128  }
  0x2e   : > { %s1858_s12 = smov 8   ;;  %p243_p13 = scmp.lt.s32.totalorder %s1853_s28, 5 }
  0x2f   : > { %1588 = dma.hbm_to_vmem [thread:$0]  (!%p2043_p10), %s2035_s5, 1024, %s2037_s21, %s2048_s9, %s1856_s29, %s1857_s30, %s1858_s12  }
  0x30   : > { %p2369_p1 = scmp.ge.s32.totalorder %s1853_s28, 1 }
  0x32   : > { %p244_p5 = pnand %p2369_p1, %p243_p13 }
  0x33   : > { %s249_s10 = sand.u32 (!%p244_p5), 1, %s1829_s22  }
  0x34   : > { %247 = sbr.rel (%p244_p5) target bundleno = 1446 (0x5a6), region = 44  ;;  %s1487_s13 = sshll.u32 (!%p244_p5), %s249_s10, 6 }
  0x35   : > { %s250_s15 = scalar_lea.sflag (!%p244_p5), [#allocation4], %s249_s10  ;;  %s253_s16 = scalar_lea.vmem (!%p244_p5), [#allocation3], %s1487_s13 }
  0x3b   : > { %1820 = dma.done.wait (%p2019_p7), %s250_s15, 1024  }
  0x3c   : > { %1822 = vsyncadd (%p2019_p7), %s250_s15, 4294966272  ;;  %p282_p11 = scmp.lt.s32.totalorder %s1841_s25, 1  ;;  %v287_v0 = vld [vmem:[%s253_s16] sm:$0xff]  ;;  %v288_v1 = vld [vmem:[%s253_s16 + $0x8] sm:$0xff]  ;;  %p1490_p7 = scmp.ne.s32.totalorder %s1837_s24, 0 }
  0x3d   : > { %v289_v2 = vld [vmem:[%s253_s16 + $0x10] sm:$0xff]  ;;  %v290_v3 = vld [vmem:[%s253_s16 + $0x18] sm:$0xff]  ;;  %v291_v4 = vld [vmem:[%s253_s16 + $0x20] sm:$0xff]  ;;  %299 = vst [vmem:[#allocation2] sm:$0xff] (!%p1490_p7), %v287_v0 }
  0x3e   : > { %s2386_s25 = smov (!%p282_p11, %s1841_s25), 1  ;;  %v292_v5 = vld [vmem:[%s253_s16 + $0x28] sm:$0xff]  ;;  %v293_v6 = vld [vmem:[%s253_s16 + $0x30] sm:$0xff]  ;;  %v294_v7 = vld [vmem:[%s253_s16 + $0x38] sm:$0xff]  ;;  %298 = sbr.rel (%p1490_p7) target bundleno = 69 (0x45), region = 52 }
  0x3f   : > { %s1506_s5 = sshll.u32 %s2386_s25, 6  ;;  %300 = vst [vmem:[#allocation2 + $0x8] sm:$0xff] (!%p1490_p7), %v288_v1  ;;  %301 = vst [vmem:[#allocation2 + $0x10] sm:$0xff] (!%p1490_p7), %v289_v2 }
  0x40   : > { %s2089_s9 = scalar_lea.vmem %s2362_s6, %s1506_s5  ;;  %302 = vst [vmem:[#allocation2 + $0x18] sm:$0xff] (!%p1490_p7), %v290_v3  ;;  %303 = vst [vmem:[#allocation2 + $0x20] sm:$0xff] (!%p1490_p7), %v291_v4 }
  0x41   : > { %304 = vst [vmem:[#allocation2 + $0x28] sm:$0xff] (!%p1490_p7), %v292_v5  ;;  %305 = vst [vmem:[#allocation2 + $0x30] sm:$0xff] (!%p1490_p7), %v293_v6 }
  0x42   : > { %306 = vst [vmem:[#allocation2 + $0x38] sm:$0xff] (!%p1490_p7), %v294_v7 }
  0x45 PF: > { %p1491_p10 = scmp.le.s32.totalorder %s1837_s24, 0 }
  0x46   : > { %v311_v8 = vld [vmem:[#allocation2] sm:$0xff] (!%p1491_p10)  ;;  %v312_v9 = vld [vmem:[#allocation2 + $0x8] sm:$0xff] (!%p1491_p10)  ;;  %v313_v10 = vld [vmem:[#allocation2 + $0x10] sm:$0xff] (!%p1491_p10) }
  0x47   : > { %310 = sbr.rel (%p1491_p10) target bundleno = 78 (0x4e), region = 56  ;;  %v319_v11 = vadd.f32 (!%p1491_p10), %v311_v8, %v287_v0  ;;  %v320_v12 = vadd.f32 (!%p1491_p10), %v312_v9, %v288_v1  ;;  %v321_v13 = vadd.f32 (!%p1491_p10), %v313_v10, %v289_v2  ;;  %v314_v14 = vld [vmem:[#allocation2 + $0x18] sm:$0xff] (!%p1491_p10)  ;;  %v315_v15 = vld [vmem:[#allocation2 + $0x20] sm:$0xff] (!%p1491_p10) }
  0x48   : > { %v316_v16 = vld [vmem:[#allocation2 + $0x28] sm:$0xff] (!%p1491_p10)  ;;  %v322_v17 = vadd.f32 (!%p1491_p10), %v314_v14, %v290_v3  ;;  %v323_v18 = vadd.f32 (!%p1491_p10), %v315_v15, %v291_v4  ;;  %v317_v20 = vld [vmem:[#allocation2 + $0x30] sm:$0xff] (!%p1491_p10) }
  0x49   : > { %v324_v19 = vadd.f32 (!%p1491_p10), %v316_v16, %v292_v5  ;;  %v318_v21 = vld [vmem:[#allocation2 + $0x38] sm:$0xff] (!%p1491_p10)  ;;  %327 = vst [vmem:[#allocation2] sm:$0xff] (!%p1491_p10), %v319_v11  ;;  %328 = vst [vmem:[#allocation2 + $0x8] sm:$0xff] (!%p1491_p10), %v320_v12  ;;  %v325_v22 = vadd.f32 (!%p1491_p10), %v317_v20, %v293_v6 }
  0x4a   : > { %329 = vst [vmem:[#allocation2 + $0x10] sm:$0xff] (!%p1491_p10), %v321_v13  ;;  %v326_v23 = vadd.f32 (!%p1491_p10), %v318_v21, %v294_v7  ;;  %330 = vst [vmem:[#allocation2 + $0x18] sm:$0xff] (!%p1491_p10), %v322_v17 }
  0x4b   : > { %331 = vst [vmem:[#allocation2 + $0x20] sm:$0xff] (!%p1491_p10), %v323_v18  ;;  %332 = vst [vmem:[#allocation2 + $0x28] sm:$0xff] (!%p1491_p10), %v324_v19 }
  0x4c   : > { %333 = vst [vmem:[#allocation2 + $0x30] sm:$0xff] (!%p1491_p10), %v325_v22  ;;  %334 = vst [vmem:[#allocation2 + $0x38] sm:$0xff] (!%p1491_p10), %v326_v23 }
  0x4e PF: > { %p1492_p6 = scmp.ne.s32.totalorder %s1837_s24, 1 }
  0x4f   : > { %v363_v32 = vld [vmem:[%s2357_s1] sm:$0xff] (!%p1492_p6)  ;;  %v364_v33 = vld [vmem:[%s2357_s1 + $0x8] sm:$0xff] (!%p1492_p6)  ;;  %v1859_v35 = vmov (!%p1492_p6), 0.0|0.0   ;;  %v365_v36 = vld [vmem:[%s2357_s1 + $0x10] sm:$0xff] (!%p1492_p6)  ;;  %vm1860_vm0 = vmmov (!%p1492_p6), 0   ;;  %v1861_v45 = vmov (!%p1492_p6), 0.0   ;;  %v380_v46 = vlaneseq (!%p1492_p6) }
  0x50   : > { %338 = sbr.rel (%p1492_p6) target bundleno = 1446 (0x5a6), region = 60  ;;  %v339_v24 = vld [vmem:[#allocation2] sm:$0xff] (!%p1492_p6)  ;;  %v340_v26 = vld [vmem:[#allocation2 + $0x8] sm:$0xff] (!%p1492_p6)  ;;  %v1569_v34 = vpack.c.bf16 (!%p1492_p6), %v364_v33, %v363_v32  ;;  %1568 = vmatprep.subr.bf16.mxu0 (!%p1492_p6), %v1859_v35  ;;  %1580 = vmatprep.subr.bf16.mxu1 (!%p1492_p6), %v1859_v35  ;;  %v366_v37 = vld [vmem:[%s2357_s1 + $0x18] sm:$0xff] (!%p1492_p6)  ;;  %vm391_vm1 = vcmask (!%p1492_p6), 130112   ;;  %vm398_vm2 = vcmask (!%p1492_p6), 195712  }
  0x51   : > { %v341_v25 = vld [vmem:[#allocation2 + $0x10] sm:$0xff] (!%p1492_p6)  ;;  %347 = vadd.xlane.f32.xlu0 (!%p1492_p6), %v339_v24  ;;  %v342_v27 = vld [vmem:[#allocation2 + $0x18] sm:$0xff] (!%p1492_p6)  ;;  %v1572_v38 = vpack.c.bf16 (!%p1492_p6), %v366_v37, %v365_v36  ;;  %v367_v39 = vld [vmem:[%s2357_s1 + $0x20] sm:$0xff] (!%p1492_p6)  ;;  %1544 = vmatprep.mubr.msk.f32.mxu0 (!%p1492_p6), %vm1860_vm0, %v1861_v45  ;;  %v381_v47 = vand.u32 (!%p1492_p6), 127, %v380_v46  ;;  %v2118_v48 = vshrl.u32 (!%p1492_p6), %v380_v46, 7  ;;  %vm405_vm3 = vcmask (!%p1492_p6), 261312  }
  0x52   : > { %351 = vadd.xlane.f32.xlu1 (!%p1492_p6), %v341_v25  ;;  %v343_v28 = vld [vmem:[#allocation2 + $0x20] sm:$0xff] (!%p1492_p6)  ;;  %v344_v29 = vld [vmem:[#allocation2 + $0x28] sm:$0xff] (!%p1492_p6)  ;;  %1570 = vmatpush3.bf16.msra.mxu0 (!%p1492_p6), %v1569_v34  ;;  %v369_v42 = vld [vmem:[%s2357_s1 + $0x30] sm:$0xff] (!%p1492_p6)  ;;  %vm412_vm4 = vcmask (!%p1492_p6), 326912   ;;  %vm419_vm5 = vcmask (!%p1492_p6), 392512   ;;  %vm426_vm6 = vcmask (!%p1492_p6), 458112  }
  0x53   : > { %v345_v30 = vld [vmem:[#allocation2 + $0x30] sm:$0xff] (!%p1492_p6)  ;;  %v346_v31 = vld [vmem:[#allocation2 + $0x38] sm:$0xff] (!%p1492_p6)  ;;  %1571 = vmatprep.subr.bf16.mxu0 (!%p1492_p6), %v1859_v35  ;;  %v368_v40 = vld [vmem:[%s2357_s1 + $0x28] sm:$0xff] (!%p1492_p6)  ;;  %1551 = vmatprep.mubr.msk.f32.mxu1 (!%p1492_p6), %vm1860_vm0, %v1861_v45  ;;  %v386_v49 = vadd.s32 (!%p1492_p6), 4294967288, %v381_v47  ;;  %v400_v50 = vadd.s32 (!%p1492_p6), 4294967272, %v381_v47  ;;  %v393_v51 = vadd.s32 (!%p1492_p6), 4294967280, %v381_v47  ;;  %v384_v55 = vsub.s32 (!%p1492_p6), %v381_v47, %v2118_v48 }
  0x54   : > { %v1575_v41 = vpack.c.bf16 (!%p1492_p6), %v368_v40, %v367_v39  ;;  %v370_v43 = vld [vmem:[%s2357_s1 + $0x38] sm:$0xff] (!%p1492_p6)  ;;  %v407_v54 = vadd.s32 (!%p1492_p6), 4294967264, %v381_v47  ;;  %v414_v59 = vadd.s32 (!%p1492_p6), 4294967256, %v381_v47  ;;  %v421_v63 = vadd.s32 (!%p1492_p6), 4294967248, %v381_v47  ;;  %v509_v23 = vld [vmem:[%s2359_s3] sm:$0xff] (!%p1492_p6)  ;;  %v510_v24 = vld [vmem:[%s2359_s3 + $0x8] sm:$0xff] (!%p1492_p6) }
  0x55   : > { %349 = vadd.xlane.f32.xlu0 (!%p1492_p6), %v340_v26  ;;  %v1578_v44 = vpack.c.bf16 (!%p1492_p6), %v370_v43, %v369_v42  ;;  %v389_v56 = vsub.s32 (!%p1492_p6), %v386_v49, %v2118_v48  ;;  %v403_v57 = vsub.s32 (!%p1492_p6), %v400_v50, %v2118_v48  ;;  %v396_v58 = vsub.s32 (!%p1492_p6), %v393_v51, %v2118_v48  ;;  %v371_v26 = vld [vmem:[%s2358_s2] sm:$0x1] (!%p1492_p6)  ;;  %s1862_s29 = smov (!%p1492_p6), 124   ;;  %s1863_s30 = smov (!%p1492_p6), 126  }
  0x56   : > { %353 = vadd.xlane.f32.xlu1 (!%p1492_p6), %v342_v27  ;;  %1573 = vmatpush3.bf16.msra.mxu0 (!%p1492_p6), %v1572_v38  ;;  %v410_v62 = vsub.s32 (!%p1492_p6), %v407_v54, %v2118_v48  ;;  %v428_v3 = vadd.s32 (!%p1492_p6), 4294967240, %v381_v47  ;;  %v417_v5 = vsub.s32 (!%p1492_p6), %v414_v59, %v2118_v48  ;;  %v424_v12 = vsub.s32 (!%p1492_p6), %v421_v63, %v2118_v48  ;;  %s1864_s12 = smov (!%p1492_p6), 122   ;;  %s1865_s10 = smov (!%p1492_p6), 118  }
  0x57   : > { %1574 = vmatprep.subr.bf16.mxu0 %v1859_v35  ;;  %vm433_vm7 = vcmask 523712   ;;  %vm435_vm8 = vcmask 523264   ;;  %v1581_v25 = vpack.c.bf16 %v510_v24, %v509_v23  ;;  %vm512_vm9 = vcmask 130048   ;;  %s1866_s13 = smov 120   ;;  %s1867_s15 = smov 114  }
  0x58   : > { %v431_v13 = vsub.s32 %v428_v3, %v2118_v48  ;;  %s1868_s16 = smov 116   ;;  %s1869_s5 = smov 110   ;;  %v1925_v45 = vmov 1983009808   ;;  %vm1168_vm10 = vcmask 15360   ;;  %vm1282_vm11 = vcmask 1041408  }
  0x59   : > { %355 = vadd.xlane.f32.xlu0 %v343_v28  ;;  %1582 = vmatpush3.bf16.msra.mxu1 %v1581_v25  ;;  %s1870_s21 = smov 112   ;;  %s1871_s8 = smov 106   ;;  %v778_v46 = vunpack.c.l.s4 %v1925_v45 }
  0x5a   : > { %357 = vadd.xlane.f32.xlu1 %v344_v29  ;;  %1576 = vmatpush3.bf16.msra.mxu0 %v1575_v41  ;;  %s1872_s25 = smov 108   ;;  %s1873_s11 = smov 102  }
  0x5b   : > { %1577 = vmatprep.subr.bf16.mxu0 %v1859_v35  ;;  %s1874_s24 = smov 104   ;;  %s1875_s14 = smov 98   ;;  %v779_v50 = vunpack.c.0.s8 %v778_v46 }
  0x5c   : > { %s1876_s18 = smov 100   ;;  %s1877_s19 = smov 94  }
  0x5d   : > { %359 = vadd.xlane.f32.xlu0 %v345_v30  ;;  %s1878_s20 = smov 96  }
  0x5e   : > { %361 = vadd.xlane.f32.xlu1 %v346_v31  ;;  %1579 = vmatpush3.bf16.msra.mxu0 %v1578_v44  ;;  %v511_v31 = vld [vmem:[%s2360_s4] sm:$0x1] }
  0xde   : > { %v348_v52 = vpop.xlane.xlu0 %347 }
  0xdf   : > { %v352_v53 = vpop.xlane.xlu1 %351  ;;  %v385_v0 = vrot.slane %v348_v52, %v384_v55  ;;  %v1926_v52 = vmov 1934713408  }
  0xe0   : > { %v397_v4 = vrot.slane %v352_v53, %v396_v58  ;;  %v810_v53 = vunpack.c.l.s4 %v1926_v52 }
  0xe2   : > { %v350_v60 = vpop.xlane.xlu0 %349  ;;  %v811_v63 = vunpack.c.0.s8 %v810_v53 }
  0xe3   : > { %v354_v61 = vpop.xlane.xlu1 %353  ;;  %v390_v1 = vrot.slane %v350_v60, %v389_v56  ;;  %v2207_v56 = vsub.s32 %v779_v50, %v2118_v48 }
  0xe4   : > { %v404_v2 = vrot.slane %v354_v61, %v403_v57 }
  0xe5   : > { %v392_v6 = vsel %vm391_vm1, %v390_v1, %v385_v0 }
  0xe6   : > { %v399_v7 = vsel %vm398_vm2, %v397_v4, %v392_v6  ;;  %v356_v8 = vpop.xlane.xlu0 %355 }
  0xe7   : > { %v358_v9 = vpop.xlane.xlu1 %357  ;;  %v406_v10 = vsel %vm405_vm3, %v404_v2, %v399_v7  ;;  %v411_v11 = vrot.slane %v356_v8, %v410_v62 }
  0xe8   : > { %v418_v14 = vrot.slane %v358_v9, %v417_v5 }
  0xe9   : > { %v413_v15 = vsel %vm412_vm4, %v411_v11, %v406_v10 }
  0xea   : > { %v360_v16 = vpop.xlane.xlu0 %359  ;;  %v420_v20 = vsel %vm419_vm5, %v418_v14, %v413_v15 }
  0xeb   : > { %v362_v17 = vpop.xlane.xlu1 %361  ;;  %v425_v18 = vrot.slane %v360_v16, %v424_v12 }
  0xec   : > { %v432_v19 = vrot.slane %v362_v17, %v431_v13  ;;  %v2218_v13 = vsub.s32 %v811_v63, %v2118_v48 }
  0xed   : > { %v427_v21 = vsel %vm426_vm6, %v425_v18, %v420_v20 }
  0xee   : > { %v434_v22 = vsel %vm433_vm7, %v432_v19, %v427_v21 }
  0xef   : > { %1545 = vmatmul.mubr.msk.f32.vlgmr.msra.gmra.mrb[0].mxu0 %vm435_vm8, %v434_v22 }
 0x1c2   : > { %v504_v27 = vpop.f32.mrb[0].mxu0 }
 0x1c3   : > { %v505_v28 = vadd.f32 %v504_v27, %v371_v26  ;;  %v1546_v29 = vpop.f32.mrb[1].mxu0 }
 0x1c5   : > { %v508_v30 = vmax.f32 %v505_v28, 0.0 }
 0x1c7   : > { %1552 = vmatmul.mubr.msk.f32.vlgmr.msra.gmra.mrb[0].mxu1 %vm512_vm9, %v508_v30 }
 0x29a   : > { %v582_v32 = vpop.f32.mrb[0].mxu1 }
 0x29b   : > { %v2141_v33 = vadd.f32 %v582_v32, %v511_v31  ;;  %v1553_v34 = vpop.f32.mrb[1].mxu1 }
 0x29d   : > { %590 = vrot.lane.b32.xlu1 %v2141_v33, %s1862_s29  ;;  %587 = vrot.lane.b32.xlu0 %v2141_v33, %s1863_s30  ;;  %s1879_s29 = smov 90   ;;  %s1880_s30 = smov 92  }
 0x2a1   : > { %593 = vrot.lane.b32.xlu1 %v2141_v33, %s1864_s12  ;;  %599 = vrot.lane.b32.xlu0 %v2141_v33, %s1865_s10  ;;  %s1881_s12 = smov 86   ;;  %s1882_s10 = smov 88  }
 0x2a5   : > { %596 = vrot.lane.b32.xlu1 %v2141_v33, %s1866_s13  ;;  %605 = vrot.lane.b32.xlu0 %v2141_v33, %s1867_s15  ;;  %s1883_s13 = smov 82   ;;  %s1884_s15 = smov 84  }
 0x2a9   : > { %602 = vrot.lane.b32.xlu1 %v2141_v33, %s1868_s16  ;;  %611 = vrot.lane.b32.xlu0 %v2141_v33, %s1869_s5  ;;  %s1885_s16 = smov 78   ;;  %s1886_s5 = smov 80  }
 0x2ad   : > { %608 = vrot.lane.b32.xlu1 %v2141_v33, %s1870_s21  ;;  %617 = vrot.lane.b32.xlu0 %v2141_v33, %s1871_s8  ;;  %s1887_s21 = smov 74   ;;  %s1888_s8 = smov 76  }
 0x2b1   : > { %614 = vrot.lane.b32.xlu1 %v2141_v33, %s1872_s25  ;;  %623 = vrot.lane.b32.xlu0 %v2141_v33, %s1873_s11  ;;  %s1889_s25 = smov 70   ;;  %s1890_s11 = smov 72  }
 0x2b5   : > { %620 = vrot.lane.b32.xlu1 %v2141_v33, %s1874_s24  ;;  %629 = vrot.lane.b32.xlu0 %v2141_v33, %s1875_s14  ;;  %s1891_s24 = smov 66   ;;  %s1892_s14 = smov 68  }
 0x2b9   : > { %626 = vrot.lane.b32.xlu1 %v2141_v33, %s1876_s18  ;;  %635 = vrot.lane.b32.xlu0 %v2141_v33, %s1877_s19  ;;  %s1893_s18 = smov 62   ;;  %s1894_s19 = smov 64  }
 0x2bd   : > { %632 = vrot.lane.b32.xlu1 %v2141_v33, %s1878_s20  ;;  %641 = vrot.lane.b32.xlu0 %v2141_v33, %s1879_s29  ;;  %s1895_s20 = smov 58   ;;  %s1896_s29 = smov 60  }
 0x2c1   : > { %638 = vrot.lane.b32.xlu1 %v2141_v33, %s1880_s30  ;;  %647 = vrot.lane.b32.xlu0 %v2141_v33, %s1881_s12  ;;  %s1897_s30 = smov 54   ;;  %s1898_s12 = smov 56  }
 0x2c5   : > { %644 = vrot.lane.b32.xlu1 %v2141_v33, %s1882_s10  ;;  %653 = vrot.lane.b32.xlu0 %v2141_v33, %s1883_s13  ;;  %s1899_s10 = smov 50   ;;  %s1900_s13 = smov 52  }
 0x2c9   : > { %650 = vrot.lane.b32.xlu1 %v2141_v33, %s1884_s15  ;;  %659 = vrot.lane.b32.xlu0 %v2141_v33, %s1885_s16  ;;  %s1901_s15 = smov 46   ;;  %s1902_s16 = smov 48  }
 0x2cd   : > { %656 = vrot.lane.b32.xlu1 %v2141_v33, %s1886_s5  ;;  %665 = vrot.lane.b32.xlu0 %v2141_v33, %s1887_s21  ;;  %s1903_s5 = smov 42   ;;  %s1904_s21 = smov 44  }
 0x2d1   : > { %662 = vrot.lane.b32.xlu1 %v2141_v33, %s1888_s8  ;;  %671 = vrot.lane.b32.xlu0 %v2141_v33, %s1889_s25  ;;  %s1905_s8 = smov 38   ;;  %s1906_s25 = smov 40  }
 0x2d5   : > { %668 = vrot.lane.b32.xlu1 %v2141_v33, %s1890_s11  ;;  %677 = vrot.lane.b32.xlu0 %v2141_v33, %s1891_s24  ;;  %s1907_s11 = smov 34   ;;  %s1908_s24 = smov 36  }
 0x2d9   : > { %674 = vrot.lane.b32.xlu1 %v2141_v33, %s1892_s14  ;;  %683 = vrot.lane.b32.xlu0 %v2141_v33, %s1893_s18  ;;  %s1909_s14 = smov 30   ;;  %s1910_s18 = smov 32  }
 0x2dd   : > { %680 = vrot.lane.b32.xlu1 %v2141_v33, %s1894_s19  ;;  %689 = vrot.lane.b32.xlu0 %v2141_v33, %s1895_s20  ;;  %s1911_s19 = smov 26   ;;  %s1912_s20 = smov 28  }
 0x2e1   : > { %686 = vrot.lane.b32.xlu1 %v2141_v33, %s1896_s29  ;;  %695 = vrot.lane.b32.xlu0 %v2141_v33, %s1897_s30  ;;  %s1913_s29 = smov 22   ;;  %s1914_s30 = smov 24  }
 0x2e5   : > { %692 = vrot.lane.b32.xlu1 %v2141_v33, %s1898_s12  ;;  %701 = vrot.lane.b32.xlu0 %v2141_v33, %s1899_s10  ;;  %s1915_s12 = smov 18   ;;  %s1916_s10 = smov 20  }
 0x2e9   : > { %698 = vrot.lane.b32.xlu1 %v2141_v33, %s1900_s13  ;;  %707 = vrot.lane.b32.xlu0 %v2141_v33, %s1901_s15  ;;  %s1917_s13 = smov 14   ;;  %s1918_s15 = smov 16  }
 0x2ed   : > { %704 = vrot.lane.b32.xlu1 %v2141_v33, %s1902_s16  ;;  %713 = vrot.lane.b32.xlu0 %v2141_v33, %s1903_s5  ;;  %s1919_s16 = smov 10   ;;  %s1920_s5 = smov 12  }
 0x2f1   : > { %710 = vrot.lane.b32.xlu1 %v2141_v33, %s1904_s21  ;;  %719 = vrot.lane.b32.xlu0 %v2141_v33, %s1905_s8  ;;  %s1921_s21 = smov 6   ;;  %s1922_s8 = smov 8  }
 0x2f5   : > { %716 = vrot.lane.b32.xlu1 %v2141_v33, %s1906_s25  ;;  %725 = vrot.lane.b32.xlu0 %v2141_v33, %s1907_s11  ;;  %s1923_s25 = smov 2   ;;  %s1924_s11 = smov 4  }
 0x2f9   : > { %722 = vrot.lane.b32.xlu1 %v2141_v33, %s1908_s24  ;;  %731 = vrot.lane.b32.xlu0 %v2141_v33, %s1909_s14 }
 0x2fd   : > { %728 = vrot.lane.b32.xlu1 %v2141_v33, %s1910_s18  ;;  %737 = vrot.lane.b32.xlu0 %v2141_v33, %s1911_s19  ;;  %s2370_s18 = sld [smem:[#allocation7_spill]] }
 0x301   : > { %734 = vrot.lane.b32.xlu1 %v2141_v33, %s1912_s20  ;;  %743 = vrot.lane.b32.xlu0 %v2141_v33, %s1913_s29 }
 0x305   : > { %740 = vrot.lane.b32.xlu1 %v2141_v33, %s1914_s30  ;;  %749 = vrot.lane.b32.xlu0 %v2141_v33, %s1915_s12 }
 0x309   : > { %746 = vrot.lane.b32.xlu1 %v2141_v33, %s1916_s10  ;;  %755 = vrot.lane.b32.xlu0 %v2141_v33, %s1917_s13 }
 0x30d   : > { %752 = vrot.lane.b32.xlu1 %v2141_v33, %s1918_s15  ;;  %761 = vrot.lane.b32.xlu0 %v2141_v33, %s1919_s16 }
 0x30f   : > { %v591_v35 = vpop.permute.xlu1 %590  ;;  %v588_v36 = vpop.permute.xlu0 %587 }
 0x310   : > { %v776_v2 = vcombine.low %v2141_v33, %v591_v35 }
 0x311   : > { %758 = vrot.lane.b32.xlu1 %v2141_v33, %s1920_s5  ;;  %767 = vrot.lane.b32.xlu0 %v2141_v33, %s1921_s21 }
 0x312   : > { %v783_v14 = vrot.slane %v776_v2, %v2207_v56 }
 0x313   : > { %v594_v37 = vpop.permute.xlu1 %593  ;;  %v600_v38 = vpop.permute.xlu0 %599 }
 0x314   : > { %v784_v59 = vcombine.low %v588_v36, %v594_v37 }
 0x315   : > { %764 = vrot.lane.b32.xlu1 %v2141_v33, %s1922_s8  ;;  %773 = vrot.lane.b32.xlu0 %v2141_v33, %s1923_s25 }
 0x316   : > { %v791_v6 = vrot.slane %v784_v59, %v2207_v56 }
 0x317   : > { %v597_v39 = vpop.permute.xlu1 %596  ;;  %v606_v40 = vpop.permute.xlu0 %605 }
 0x318   : > { %v800_v60 = vcombine.low %v600_v38, %v606_v40  ;;  %v808_v17 = vcombine.low %v783_v14, %v791_v6 }
 0x319   : > { %770 = vrot.lane.b32.xlu1 %v2141_v33, %s1924_s11 }
 0x31a   : > { %v807_v7 = vrot.slane %v800_v60, %v2207_v56  ;;  %v815_v25 = vrot.slane %v808_v17, %v2218_v13 }
 0x31b   : > { %v603_v41 = vpop.permute.xlu1 %602  ;;  %v612_v42 = vpop.permute.xlu0 %611 }
 0x31c   : > { %v792_v57 = vcombine.low %v597_v39, %v603_v41 }
 0x31e   : > { %v799_v3 = vrot.slane %v792_v57, %v2207_v56 }
 0x31f   : > { %v609_v43 = vpop.permute.xlu1 %608  ;;  %v618_v44 = vpop.permute.xlu0 %617 }
 0x320   : > { %v833_v58 = vcombine.low %v612_v42, %v618_v44  ;;  %v816_v15 = vcombine.low %v799_v3, %v807_v7 }
 0x322   : > { %v840_v4 = vrot.slane %v833_v58, %v2207_v56  ;;  %v823_v23 = vrot.slane %v816_v15, %v2218_v13 }
 0x323   : > { %v615_v47 = vpop.permute.xlu1 %614  ;;  %v624_v49 = vpop.permute.xlu0 %623 }
 0x324   : > { %v825_v51 = vcombine.low %v609_v43, %v615_v47  ;;  %v2229_v29 = vcombine.low %v815_v25, %v823_v23 }
 0x326   : > { %v832_v61 = vrot.slane %v825_v51, %v2207_v56  ;;  %v1169_v36 = vsel %vm1168_vm10, %v2229_v29, -inf }
 0x327   : > { %v621_v54 = vpop.permute.xlu1 %620  ;;  %v630_v55 = vpop.permute.xlu0 %629 }
 0x328   : > { %v849_v62 = vcombine.low %v624_v49, %v630_v55  ;;  %v857_v8 = vcombine.low %v832_v61, %v840_v4 }
 0x32a   : > { %v856_v9 = vrot.slane %v849_v62, %v2207_v56  ;;  %v864_v18 = vrot.slane %v857_v8, %v2218_v13 }
 0x32b   : > { %v627_v0 = vpop.permute.xlu1 %626  ;;  %v636_v1 = vpop.permute.xlu0 %635 }
 0x32c   : > { %v841_v5 = vcombine.low %v621_v54, %v627_v0 }
 0x32e   : > { %v848_v10 = vrot.slane %v841_v5, %v2207_v56 }
 0x32f   : > { %v633_v11 = vpop.permute.xlu1 %632  ;;  %v642_v12 = vpop.permute.xlu0 %641 }
 0x330   : > { %v865_v16 = vcombine.low %v848_v10, %v856_v9  ;;  %v882_v28 = vcombine.low %v636_v1, %v642_v12 }
 0x332   : > { %v872_v19 = vrot.slane %v865_v16, %v2218_v13  ;;  %v889_v34 = vrot.slane %v882_v28, %v2207_v56 }
 0x333   : > { %v639_v20 = vpop.permute.xlu1 %638  ;;  %v648_v21 = vpop.permute.xlu0 %647 }
 0x334   : > { %v2223_v22 = vcombine.low %v864_v18, %v872_v19  ;;  %v874_v24 = vcombine.low %v633_v11, %v639_v20 }
 0x336   : > { %v1172_v48 = vsel %vm1168_vm10, %v2223_v22, -inf  ;;  %v881_v30 = vrot.slane %v874_v24, %v2207_v56 }
 0x337   : > { %v645_v26 = vpop.permute.xlu1 %644  ;;  %1173 = vmax.xlane.f32.xlu0 %v1172_v48  ;;  %v654_v27 = vpop.permute.xlu0 %653 }
 0x338   : > { %v898_v31 = vcombine.low %v648_v21, %v654_v27  ;;  %v906_v37 = vcombine.low %v881_v30, %v889_v34 }
 0x33a   : > { %v905_v38 = vrot.slane %v898_v31, %v2207_v56  ;;  %v913_v43 = vrot.slane %v906_v37, %v2218_v13 }
 0x33b   : > { %v651_v32 = vpop.permute.xlu1 %650  ;;  %v660_v33 = vpop.permute.xlu0 %659 }
 0x33c   : > { %v890_v35 = vcombine.low %v645_v26, %v651_v32 }
 0x33d   : > { %1170 = vmax.xlane.f32.xlu1 %v1169_v36 }
 0x33e   : > { %v897_v39 = vrot.slane %v890_v35, %v2207_v56 }
 0x33f   : > { %v657_v40 = vpop.permute.xlu1 %656  ;;  %v666_v41 = vpop.permute.xlu0 %665 }
 0x340   : > { %v914_v42 = vcombine.low %v897_v39, %v905_v38  ;;  %v931_v53 = vcombine.low %v660_v33, %v666_v41 }
 0x342   : > { %v921_v44 = vrot.slane %v914_v42, %v2218_v13  ;;  %v938_v59 = vrot.slane %v931_v53, %v2207_v56 }
 0x343   : > { %v663_v45 = vpop.permute.xlu1 %662  ;;  %v672_v46 = vpop.permute.xlu0 %671 }
 0x344   : > { %v2239_v47 = vcombine.low %v913_v43, %v921_v44  ;;  %v923_v49 = vcombine.low %v657_v40, %v663_v45 }
 0x346   : > { %v1175_v50 = vsel %vm1168_vm10, %v2239_v47, -inf  ;;  %v930_v54 = vrot.slane %v923_v49, %v2207_v56 }
 0x347   : > { %v669_v51 = vpop.permute.xlu1 %668  ;;  %1176 = vmax.xlane.f32.xlu0 %v1175_v50  ;;  %v678_v52 = vpop.permute.xlu0 %677 }
 0x348   : > { %v947_v55 = vcombine.low %v672_v46, %v678_v52  ;;  %v955_v61 = vcombine.low %v930_v54, %v938_v59 }
 0x34a   : > { %v954_v62 = vrot.slane %v947_v55, %v2207_v56  ;;  %v962_v3 = vrot.slane %v955_v61, %v2218_v13 }
 0x34b   : > { %v675_v57 = vpop.permute.xlu1 %674  ;;  %v684_v58 = vpop.permute.xlu0 %683 }
 0x34c   : > { %v939_v60 = vcombine.low %v669_v51, %v675_v57 }
 0x34e   : > { %v946_v63 = vrot.slane %v939_v60, %v2207_v56 }
 0x34f   : > { %v681_v0 = vpop.permute.xlu1 %680  ;;  %v690_v1 = vpop.permute.xlu0 %689 }
 0x350   : > { %v963_v2 = vcombine.low %v946_v63, %v954_v62  ;;  %v980_v12 = vcombine.low %v684_v58, %v690_v1 }
 0x352   : > { %v970_v4 = vrot.slane %v963_v2, %v2218_v13  ;;  %v987_v18 = vrot.slane %v980_v12, %v2207_v56 }
 0x353   : > { %v687_v5 = vpop.permute.xlu1 %686  ;;  %v696_v6 = vpop.permute.xlu0 %695 }
 0x354   : > { %v2249_v7 = vcombine.low %v962_v3, %v970_v4  ;;  %v972_v8 = vcombine.low %v681_v0, %v687_v5 }
 0x356   : > { %v1178_v9 = vsel %vm1168_vm10, %v2249_v7, -inf  ;;  %v979_v14 = vrot.slane %v972_v8, %v2207_v56 }
 0x357   : > { %v693_v10 = vpop.permute.xlu1 %692  ;;  %1179 = vmax.xlane.f32.xlu0 %v1178_v9  ;;  %v702_v11 = vpop.permute.xlu0 %701 }
 0x358   : > { %v996_v15 = vcombine.low %v696_v6, %v702_v11  ;;  %v1004_v20 = vcombine.low %v979_v14, %v987_v18 }
 0x35a   : > { %v1003_v21 = vrot.slane %v996_v15, %v2207_v56  ;;  %v1011_v26 = vrot.slane %v1004_v20, %v2218_v13 }
 0x35b   : > { %v699_v16 = vpop.permute.xlu1 %698  ;;  %v708_v17 = vpop.permute.xlu0 %707 }
 0x35c   : > { %v988_v19 = vcombine.low %v693_v10, %v699_v16 }
 0x35e   : > { %v995_v23 = vrot.slane %v988_v19, %v2207_v56 }
 0x35f   : > { %v705_v24 = vpop.permute.xlu1 %704  ;;  %v714_v48 = vpop.permute.xlu0 %713 }
 0x360   : > { %v1012_v25 = vcombine.low %v995_v23, %v1003_v21  ;;  %v1029_v36 = vcombine.low %v708_v17, %v714_v48 }
 0x362   : > { %v1019_v27 = vrot.slane %v1012_v25, %v2218_v13  ;;  %v1036_v41 = vrot.slane %v1029_v36, %v2207_v56 }
 0x363   : > { %v711_v28 = vpop.permute.xlu1 %710  ;;  %v720_v30 = vpop.permute.xlu0 %719 }
 0x364   : > { %v2259_v31 = vcombine.low %v1011_v26, %v1019_v27  ;;  %v1021_v32 = vcombine.low %v705_v24, %v711_v28 }
 0x366   : > { %v1181_v33 = vsel %vm1168_vm10, %v2259_v31, -inf  ;;  %v1028_v37 = vrot.slane %v1021_v32, %v2207_v56 }
 0x367   : > { %v717_v34 = vpop.permute.xlu1 %716  ;;  %1182 = vmax.xlane.f32.xlu1 %v1181_v33  ;;  %v726_v35 = vpop.permute.xlu0 %725 }
 0x368   : > { %v1045_v38 = vcombine.low %v720_v30, %v726_v35  ;;  %v1053_v43 = vcombine.low %v1028_v37, %v1036_v41 }
 0x36a   : > { %v1052_v44 = vrot.slane %v1045_v38, %v2207_v56  ;;  %v1060_v51 = vrot.slane %v1053_v43, %v2218_v13 }
 0x36b   : > { %v723_v39 = vpop.permute.xlu1 %722  ;;  %v732_v40 = vpop.permute.xlu0 %731 }
 0x36c   : > { %v1037_v42 = vcombine.low %v717_v34, %v723_v39 }
 0x36e   : > { %v1044_v45 = vrot.slane %v1037_v42, %v2207_v56 }
 0x36f   : > { %v729_v46 = vpop.permute.xlu1 %728  ;;  %v738_v49 = vpop.permute.xlu0 %737 }
 0x370   : > { %v1061_v50 = vcombine.low %v1044_v45, %v1052_v44  ;;  %v1078_v61 = vcombine.low %v732_v40, %v738_v49 }
 0x372   : > { %v1068_v52 = vrot.slane %v1061_v50, %v2218_v13  ;;  %v1085_v2 = vrot.slane %v1078_v61, %v2207_v56 }
 0x373   : > { %v735_v53 = vpop.permute.xlu1 %734  ;;  %v744_v54 = vpop.permute.xlu0 %743 }
 0x374   : > { %v2269_v55 = vcombine.low %v1060_v51, %v1068_v52  ;;  %v1070_v57 = vcombine.low %v729_v46, %v735_v53 }
 0x376   : > { %v1184_v58 = vsel %vm1168_vm10, %v2269_v55, -inf  ;;  %v1077_v62 = vrot.slane %v1070_v57, %v2207_v56 }
 0x377   : > { %v741_v59 = vpop.permute.xlu1 %740  ;;  %1185 = vmax.xlane.f32.xlu0 %v1184_v58  ;;  %v750_v60 = vpop.permute.xlu0 %749 }
 0x378   : > { %v1094_v63 = vcombine.low %v744_v54, %v750_v60  ;;  %v1102_v4 = vcombine.low %v1077_v62, %v1085_v2 }
 0x37a   : > { %v1101_v5 = vrot.slane %v1094_v63, %v2207_v56  ;;  %v1109_v11 = vrot.slane %v1102_v4, %v2218_v13 }
 0x37b   : > { %v747_v0 = vpop.permute.xlu1 %746  ;;  %v756_v1 = vpop.permute.xlu0 %755 }
 0x37c   : > { %v1086_v3 = vcombine.low %v741_v59, %v747_v0 }
 0x37e   : > { %v1093_v6 = vrot.slane %v1086_v3, %v2207_v56 }
 0x37f   : > { %v753_v8 = vpop.permute.xlu1 %752  ;;  %v762_v9 = vpop.permute.xlu0 %761 }
 0x380   : > { %v1110_v10 = vcombine.low %v1093_v6, %v1101_v5  ;;  %v1127_v21 = vcombine.low %v756_v1, %v762_v9 }
 0x382   : > { %v1117_v12 = vrot.slane %v1110_v10, %v2218_v13  ;;  %v1134_v25 = vrot.slane %v1127_v21, %v2207_v56 }
 0x383   : > { %v759_v14 = vpop.permute.xlu1 %758  ;;  %v768_v15 = vpop.permute.xlu0 %767 }
 0x384   : > { %v2279_v16 = vcombine.low %v1109_v11, %v1117_v12  ;;  %v1119_v17 = vcombine.low %v753_v8, %v759_v14 }
 0x386   : > { %v1187_v18 = vsel %vm1168_vm10, %v2279_v16, -inf  ;;  %v1126_v23 = vrot.slane %v1119_v17, %v2207_v56 }
 0x387   : > { %v765_v19 = vpop.permute.xlu1 %764  ;;  %1188 = vmax.xlane.f32.xlu1 %v1187_v18  ;;  %v774_v20 = vpop.permute.xlu0 %773 }
 0x388   : > { %v1143_v24 = vcombine.low %v768_v15, %v774_v20  ;;  %v1151_v27 = vcombine.low %v1126_v23, %v1134_v25 }
 0x38a   : > { %v1150_v28 = vrot.slane %v1143_v24, %v2207_v56  ;;  %v1158_v33 = vrot.slane %v1151_v27, %v2218_v13 }
 0x38b   : > { %v771_v48 = vpop.permute.xlu1 %770 }
 0x38c   : > { %v1135_v26 = vcombine.low %v765_v19, %v771_v48 }
 0x38e   : > { %v1142_v30 = vrot.slane %v1135_v26, %v2207_v56 }
 0x390   : > { %v1159_v32 = vcombine.low %v1142_v30, %v1150_v28 }
 0x392   : > { %v1166_v34 = vrot.slane %v1159_v32, %v2218_v13 }
 0x394   : > { %v1167_v35 = vcombine.low %v1158_v33, %v1166_v34 }
 0x396   : > { %v1190_v36 = vsel %vm1168_vm10, %v1167_v35, -inf }
 0x397   : > { %1191 = vmax.xlane.f32.xlu0 %v1190_v36 }
 0x3c4   : > { %v1174_v37 = vpop.xlane.xlu0 %1173 }
 0x3c5   : > { %v1194_v38 = vsub.f32 %v2223_v22, %v1174_v37 }
 0x3c7   : > { %v1203_v39 = vmul.f32 1.442695, %v1194_v38 }
 0x3c9   : > { %1725 = vpow2.f32 %v1203_v39 }
 0x3ca   : > { %v1171_v40 = vpop.xlane.xlu1 %1170 }
 0x3cb   : > { %v1193_v41 = vsub.f32 %v2229_v29, %v1171_v40 }
 0x3cd   : > { %v1201_v42 = vmul.f32 1.442695, %v1193_v41 }
 0x3cf   : > { %1727 = vpow2.f32 %v1201_v42 }
 0x3d3   : > { %v1726_v56 = vpop.eup %1725 }
 0x3d4   : > { %v1177_v43 = vpop.xlane.xlu0 %1176  ;;  %v1220_v44 = vsel %vm1168_vm10, %v1726_v56, 0.0 }
 0x3d5   : > { %v1195_v13 = vsub.f32 %v2239_v47, %v1177_v43  ;;  %1221 = vadd.xlane.f32.xlu0 %v1220_v44  ;;  %v1257_v47 = vld [vmem:[%s2370_s18] sm:$0x3] }
 0x3d6   : > { %1554 = vmatprep.subr.msk.mxu1 %vm1282_vm11, %v1257_v47 }
 0x3d7   : > { %v1205_v45 = vmul.f32 1.442695, %v1195_v13  ;;  %1555 = vmatpush3.msk.msra.mxu1 %vm1282_vm11, %v1257_v47 }
 0x3d9   : > { %v1728_v46 = vpop.eup %1727  ;;  %1729 = vpow2.f32 %v1205_v45 }
 0x3da   : > { %v1217_v49 = vsel %vm1168_vm10, %v1728_v46, 0.0 }
 0x3db   : > { %1218 = vadd.xlane.f32.xlu1 %v1217_v49 }
 0x3e3   : > { %v1730_v22 = vpop.eup %1729 }
 0x3e4   : > { %v1180_v50 = vpop.xlane.xlu0 %1179  ;;  %v1223_v51 = vsel %vm1168_vm10, %v1730_v22, 0.0 }
 0x3e5   : > { %v1196_v29 = vsub.f32 %v2249_v7, %v1180_v50  ;;  %1224 = vadd.xlane.f32.xlu1 %v1223_v51 }
 0x3e7   : > { %v1207_v52 = vmul.f32 1.442695, %v1196_v29 }
 0x3e9   : > { %1731 = vpow2.f32 %v1207_v52 }
 0x3f3   : > { %v1732_v53 = vpop.eup %1731 }
 0x3f4   : > { %v1183_v54 = vpop.xlane.xlu1 %1182  ;;  %v1226_v57 = vsel %vm1168_vm10, %v1732_v53, 0.0 }
 0x3f5   : > { %v1197_v58 = vsub.f32 %v2259_v31, %v1183_v54  ;;  %1227 = vadd.xlane.f32.xlu0 %v1226_v57 }
 0x3f7   : > { %v1209_v59 = vmul.f32 1.442695, %v1197_v58 }
 0x3f9   : > { %1733 = vpow2.f32 %v1209_v59 }
 0x403   : > { %v1734_v7 = vpop.eup %1733 }
 0x404   : > { %v1186_v60 = vpop.xlane.xlu0 %1185  ;;  %v1229_v61 = vsel %vm1168_vm10, %v1734_v7, 0.0 }
 0x405   : > { %v1198_v62 = vsub.f32 %v2269_v55, %v1186_v60  ;;  %1230 = vadd.xlane.f32.xlu1 %v1229_v61 }
 0x407   : > { %v1211_v63 = vmul.f32 1.442695, %v1198_v62 }
 0x409   : > { %1735 = vpow2.f32 %v1211_v63 }
 0x413   : > { %v1736_v0 = vpop.eup %1735 }
 0x414   : > { %v1189_v1 = vpop.xlane.xlu1 %1188  ;;  %v1232_v2 = vsel %vm1168_vm10, %v1736_v0, 0.0 }
 0x415   : > { %v1199_v3 = vsub.f32 %v2279_v16, %v1189_v1  ;;  %1233 = vadd.xlane.f32.xlu0 %v1232_v2 }
 0x417   : > { %v1213_v31 = vmul.f32 1.442695, %v1199_v3 }
 0x419   : > { %1737 = vpow2.f32 %v1213_v31 }
 0x423   : > { %v1738_v4 = vpop.eup %1737 }
 0x424   : > { %v1192_v5 = vpop.xlane.xlu0 %1191  ;;  %v1235_v6 = vsel %vm1168_vm10, %v1738_v4, 0.0 }
 0x425   : > { %v1200_v8 = vsub.f32 %v1167_v35, %v1192_v5  ;;  %1236 = vadd.xlane.f32.xlu1 %v1235_v6 }
 0x427   : > { %v1215_v9 = vmul.f32 1.442695, %v1200_v8 }
 0x429   : > { %1739 = vpow2.f32 %v1215_v9 }
 0x433   : > { %v1740_v55 = vpop.eup %1739 }
 0x434   : > { %v1238_v10 = vsel %vm1168_vm10, %v1740_v55, 0.0 }
 0x435   : > { %1239 = vadd.xlane.f32.xlu0 %v1238_v10 }
 0x462   : > { %v1222_v11 = vpop.xlane.xlu0 %1221 }
 0x463   : > { %1741 = vrcp.f32 %v1222_v11 }
 0x468   : > { %v1219_v12 = vpop.xlane.xlu1 %1218 }
 0x469   : > { %1743 = vrcp.f32 %v1219_v12 }
 0x46d   : > { %v1742_v14 = vpop.eup %1741 }
 0x46e   : > { %v1244_v18 = vmul.f32 %v1742_v14, %v1726_v56 }
 0x472   : > { %v1225_v15 = vpop.xlane.xlu1 %1224 }
 0x473   : > { %v1744_v16 = vpop.eup %1743  ;;  %1745 = vrcp.f32 %v1225_v15 }
 0x474   : > { %v1242_v17 = vmul.f32 %v1744_v16, %v1728_v46 }
 0x476   : > { %1556 = vmatprep.mubr.msk.f32.mxu1 %vm1168_vm10, %v1242_v17 }
 0x477   : > { %1557 = vmatmul.mubr.msk.f32.vlgmr.msra.gmra.mrb[2].mxu1 %vm1168_vm10, %v1244_v18 }
 0x47d   : > { %v1746_v19 = vpop.eup %1745 }
 0x47e   : > { %v1246_v20 = vmul.f32 %v1746_v19, %v1730_v22 }
 0x480   : > { %1559 = vmatprep.mubr.msk.f32.mxu1 %vm1168_vm10, %v1246_v20 }
 0x482   : > { %v1228_v21 = vpop.xlane.xlu0 %1227 }
 0x483   : > { %1747 = vrcp.f32 %v1228_v21 }
 0x48d   : > { %v1748_v23 = vpop.eup %1747 }
 0x48e   : > { %v1248_v24 = vmul.f32 %v1748_v23, %v1732_v53 }
 0x490   : > { %1560 = vmatmul.mubr.msk.f32.gmra.mrb[4].mxu1 %vm1168_vm10, %v1248_v24 }
 0x492   : > { %v1231_v48 = vpop.xlane.xlu1 %1230 }
 0x493   : > { %1749 = vrcp.f32 %v1231_v48 }
 0x49d   : > { %v1750_v25 = vpop.eup %1749 }
 0x49e   : > { %v1250_v26 = vmul.f32 %v1750_v25, %v1734_v7 }
 0x4a0   : > { %1562 = vmatprep.mubr.msk.f32.mxu1 %vm1168_vm10, %v1250_v26 }
 0x4a2   : > { %v1234_v27 = vpop.xlane.xlu0 %1233 }
 0x4a3   : > { %1751 = vrcp.f32 %v1234_v27 }
 0x4ad   : > { %v1752_v28 = vpop.eup %1751 }
 0x4ae   : > { %v1252_v30 = vmul.f32 %v1752_v28, %v1736_v0 }
 0x4b0   : > { %1563 = vmatmul.mubr.msk.f32.gmra.mrb[6].mxu1 %vm1168_vm10, %v1252_v30 }
 0x4b2   : > { %v1237_v32 = vpop.xlane.xlu1 %1236 }
 0x4b3   : > { %1753 = vrcp.f32 %v1237_v32 }
 0x4bd   : > { %v1754_v33 = vpop.eup %1753 }
 0x4be   : > { %v1254_v34 = vmul.f32 %v1754_v33, %v1738_v4 }
 0x4c0   : > { %1565 = vmatprep.mubr.msk.f32.mxu1 %vm1168_vm10, %v1254_v34 }
 0x4c2   : > { %v1240_v35 = vpop.xlane.xlu0 %1239 }
 0x4c3   : > { %1755 = vrcp.f32 %v1240_v35 }
 0x4cd   : > { %v1756_v36 = vpop.eup %1755 }
 0x4ce   : > { %v1256_v37 = vmul.f32 %v1756_v36, %v1740_v55 }
 0x4d0   : > { %1566 = vmatmul.mubr.msk.f32.gmra.mrb[8].mxu1 %vm1168_vm10, %v1256_v37 }
 0x54a   : > { %v1558_v38 = vpop.f32.mrb[2].mxu1 }
 0x54b   : > { %1392 = vst.msk [vmem:[%s2089_s9 + $0x8] sm:$0xff] %vm512_vm9, %v1558_v38  ;;  %v1352_v39 = vpop.f32.mrb[3].mxu1 }
 0x54c   : > { %1391 = vst.msk [vmem:[%s2089_s9] sm:$0xff] %vm512_vm9, %v1352_v39 }
 0x563   : > { %v1561_v40 = vpop.f32.mrb[4].mxu1 }
 0x564   : > { %1394 = vst.msk [vmem:[%s2089_s9 + $0x18] sm:$0xff] %vm512_vm9, %v1561_v40  ;;  %v1362_v41 = vpop.f32.mrb[5].mxu1 }
 0x565   : > { %1393 = vst.msk [vmem:[%s2089_s9 + $0x10] sm:$0xff] %vm512_vm9, %v1362_v41 }
 0x583   : > { %v1564_v42 = vpop.f32.mrb[6].mxu1 }
 0x584   : > { %1396 = vst.msk [vmem:[%s2089_s9 + $0x28] sm:$0xff] %vm512_vm9, %v1564_v42  ;;  %v1372_v56 = vpop.f32.mrb[7].mxu1 }
 0x585   : > { %1395 = vst.msk [vmem:[%s2089_s9 + $0x20] sm:$0xff] %vm512_vm9, %v1372_v56 }
 0x5a3   : > { %v1567_v43 = vpop.f32.mrb[8].mxu1 }
 0x5a4   : > { %1398 = vst.msk [vmem:[%s2089_s9 + $0x38] sm:$0xff] %vm512_vm9, %v1567_v43  ;;  %v1382_v44 = vpop.f32.mrb[9].mxu1 }
 0x5a5   : > { %1397 = vst.msk [vmem:[%s2089_s9 + $0x30] sm:$0xff] %vm512_vm9, %v1382_v44 }
 0x5a6 PF: > { %s19_s28 = sadd.s32 1, %s1853_s28   ;;  %s2371_s19 = sld [smem:[#allocation6_spill]] }
 0x5a7   : > { %p16_p8 = scmp.ge.s32.totalorder %s19_s28, 6   ;;  %s2372_s21 = smov %s1829_s22 }
 0x5a8   : > { %s2373_s22 = smov %s1833_s23  ;;  %s2374_s23 = smov %s2029_s17 }
 0x5a9   : > { %s2375_s24 = smov %s1845_s26  ;;  %s2376_s25 = smov %s1849_s27 }
 0x5aa   : > { %s2378_s27 = smov %s2384_s7  ;;  %18 = sbr.rel (!%p16_p8) target bundleno = 7 (0x7), region = 96 }
 0x5ac   : > { %s2377_s26 = smov %s2371_s19 }
 0x5b1   :  { %1420 = vsyncpa [#allocation4], 1 }
 0x5b2   :  { %1422 = vsyncpa [#allocation4 + $0x1], 1 }

</bundles_post_ra>
